<compile_context>
chip_gen: v7x
topology: tpu7x:2x2x1
jax: 0.10.0
libtpu: 0.0.40
codegen_flags: <defaults>
</compile_context>

<pallas_src>
import numpy as np
import jax
import jax.numpy as jnp
from jax.experimental import pallas as pl
from jax.experimental.pallas import tpu as pltpu

# ----- synthetic constants (small shapes) -----
B = 2                       # batch
M = 4                       # constants['M']
NT, NN = 2, 4               # constants['Nt'], constants['N']
LS = NT * NN                # Ls = Nt * N = 8
LW = 6                      # constants['Lw']
LY = 10                     # constants['Ly']
N_STEP = 3                  # constants['N_step']
MODULUS = 1.0               # constants['modulus']
D = 2 * LS + 2 * LW + LY    # feature dim of x (38)
DF = 2 * LW + LY + 1        # step-independent features [wr, wi, y, 1] (23)
DF_PAD = 24                 # padded to a sublane multiple for clean MXU feed
OUT_PAD = 128               # fused head output width (eta | rho | mu | zero-pad)
# packed output lane layout
S_LANES = (N_STEP + 1) * 2 * LS        # per-step [s_re | s_im] blocks (64 lanes)
MU_LANES = N_STEP * M                  # mu, step-major (12 lanes)


def srel_kernel(angle_ref, xf_ref, w_ref, out_ref):
    angle = angle_ref[...]                                 # (B, 2*Ls) = [phi, phi-pi/2]
    xf = xf_ref[...]                                       # (B*M, DF_PAD)

    # Hoisted: phi-independent contributions for ALL steps with one MXU push.
    wf_all = w_ref[2 * LS:, :]                             # (DF_PAD, N_STEP*128)
    part_f_all = jnp.dot(xf, wf_all,
                         preferred_element_type=jnp.float32)  # (B*M, N_STEP*128)

    s_parts, mu_parts = [], []

    for t in range(N_STEP):                                # statically unrolled
        xs = MODULUS * jnp.cos(angle)                      # (B, 2*Ls) = [s_re | s_im]
        s_parts.append(xs)

        # per-step s-feature matmul (the only MXU push on the serial chain)
        ws_t = w_ref[:2 * LS, t * OUT_PAD:(t + 1) * OUT_PAD]       # (2*Ls, 128)
        part_s = jnp.dot(xs, ws_t,
                         preferred_element_type=jnp.float32)       # (B, 128)
        part_f = part_f_all[:, t * OUT_PAD:(t + 1) * OUT_PAD]
        out = part_f.reshape(B, M, OUT_PAD) + part_s[:, None, :]   # (B, M, 128)

        eta = out[:, :, :LS]                                       # (B, M, Ls)
        g = jax.nn.sigmoid(out[:, :, LS:LS + 2])                   # (B, M, 2) = [rho, mu]
        mu_parts.append(g[:, :, 1])                                # (B, M)
        weight = g[:, :, 0:1] * g[:, :, 1:2]                       # (B, M, 1) = rho*mu

        eta_net = jnp.sum(weight * eta, axis=1)                    # (B, Ls)
        angle = angle - jnp.concatenate([eta_net, eta_net], axis=-1)

    # final s after the last update
    s_parts.append(MODULUS * jnp.cos(angle))

    # single lane-dense packed store: [s step blocks | mu | zero pad]
    s_all = jnp.concatenate(s_parts, axis=-1)                      # (B, S_LANES)
    mu_all = jnp.concatenate(mu_parts, axis=-1)                    # (B, MU_LANES)
    pad = jnp.zeros((B, OUT_PAD - S_LANES - MU_LANES), jnp.float32)
    out_ref[...] = jnp.concatenate([s_all, mu_all, pad], axis=-1)  # (B, 128)


def fuse_params(w_eta, b_eta, w_sc, b_sc):
    """Pack [eta | rho | mu] heads + biases into one lane/sublane-padded weight.

    Returns (2*Ls + DF_PAD, N_STEP*OUT_PAD): rows = [s-features | wr|wi|y|bias|0],
    lanes = step-major 128-wide blocks of [eta (Ls) | rho | mu | zero pad].
    """
    w_sc_b = jnp.broadcast_to(w_sc[None], (N_STEP, D, 2))
    b_sc_b = jnp.broadcast_to(b_sc[None], (N_STEP, 1, 2))
    w_all = jnp.concatenate([w_eta, w_sc_b], axis=-1)        # (N_STEP, D, Ls+2)
    b_all = jnp.concatenate([b_eta, b_sc_b], axis=-1)        # (N_STEP, 1, Ls+2)
    w_full = jnp.concatenate([w_all, b_all], axis=1)         # (N_STEP, D+1, Ls+2)
    w_full = jnp.pad(w_full, ((0, 0),
                              (0, (2 * LS + DF_PAD) - (D + 1)),   # 39 -> 40 rows
                              (0, OUT_PAD - (LS + 2))))           # 10 -> 128 lanes
    w_packed = jnp.transpose(w_full, (1, 0, 2)).reshape(
        2 * LS + DF_PAD, N_STEP * OUT_PAD)
    return w_packed.astype(jnp.float32)


def srel_rep_ss_inter(phi0_batch, w_M_batch, y_M, params):
    """phi0_batch: (B, Ls) f32, w_M_batch: (B, Lw, M) complex64, y_M: (Ly, M) f32."""
    w_eta, b_eta, w_sc, b_sc = params
    w_packed = fuse_params(w_eta, b_eta, w_sc, b_sc)

    phi0 = phi0_batch.astype(jnp.float32)                                # (B, Ls)
    angle0 = jnp.concatenate([phi0, phi0 - jnp.pi / 2], axis=-1)         # (B, 2*Ls)

    wr = jnp.real(w_M_batch).transpose(0, 2, 1).astype(jnp.float32)      # (B, M, Lw)
    wi = jnp.imag(w_M_batch).transpose(0, 2, 1).astype(jnp.float32)      # (B, M, Lw)
    y_t = jnp.broadcast_to(y_M.T.astype(jnp.float32)[None], (B, M, LY))  # (B, M, Ly)
    ones = jnp.ones((B, M, 1), jnp.float32)
    zpad = jnp.zeros((B, M, DF_PAD - DF), jnp.float32)
    xf = jnp.concatenate([wr, wi, y_t, ones, zpad], axis=-1).reshape(B * M, DF_PAD)

    packed = pl.pallas_call(
        srel_kernel,
        out_shape=jax.ShapeDtypeStruct((B, OUT_PAD), jnp.float32),
        grid=(1,),
        in_specs=[
            pl.BlockSpec((B, 2 * LS), lambda i: (0, 0)),                        # angle0
            pl.BlockSpec((B * M, DF_PAD), lambda i: (0, 0)),                    # fixed feats
            pl.BlockSpec((2 * LS + DF_PAD, N_STEP * OUT_PAD), lambda i: (0, 0)),# fused weights
        ],
        out_specs=pl.BlockSpec((B, OUT_PAD), lambda i: (0, 0)),
        compiler_params=pltpu.CompilerParams(
            dimension_semantics=("arbitrary",)),
    )(angle0, xf, w_packed)

    # unpack the lane-dense slab in the wrapper
    s_all = packed[:, :S_LANES].reshape(B, N_STEP + 1, 2 * LS)
    s_re = s_all[:, :, :LS]
    s_im = s_all[:, :, LS:]
    mu_stack = packed[:, S_LANES:S_LANES + MU_LANES].reshape(B, N_STEP, M)
    s_stack = (s_re + 1j * s_im).astype(jnp.complex64)       # (B, N_STEP+1, Ls)
    return {'s_stack_batch': s_stack, 'mu_M_stack_batch': mu_stack}


def reference_numpy(phi0, wr, wi, y, w_eta, b_eta, w_sc, b_sc):
    phi0 = np.asarray(phi0, np.float64)
    wr = np.asarray(wr, np.float64)
    wi = np.asarray(wi, np.float64)
    y = np.asarray(y, np.float64)
    w_eta = np.asarray(w_eta, np.float64)
    b_eta = np.asarray(b_eta, np.float64)
    w_sc = np.asarray(w_sc, np.float64)
    b_sc = np.asarray(b_sc, np.float64)
    s_stack = np.zeros((B, N_STEP + 1, LS), np.complex128)
    mu_stack = np.zeros((B, N_STEP, M), np.float64)
    for b in range(B):
        phi = phi0[b].copy()
        for t in range(N_STEP):
            s_re = MODULUS * np.cos(phi)
            s_im = MODULUS * np.sin(phi)
            s_stack[b, t] = s_re + 1j * s_im
            eta_net = np.zeros(LS)
            for m in range(M):
                x = np.concatenate([s_re, s_im, wr[b, m], wi[b, m], y[m]])
                eta = x @ w_eta[t] + b_eta[t, 0]
                sc = x @ w_sc + b_sc[0]
                rho = 1.0 / (1.0 + np.exp(-sc[0]))
                mu = 1.0 / (1.0 + np.exp(-sc[1]))
                eta_net += mu * rho * eta
                mu_stack[b, t, m] = mu
            phi = phi - eta_net
        s_stack[b, N_STEP] = MODULUS * np.cos(phi) + 1j * MODULUS * np.sin(phi)
    return s_stack, mu_stack


if __name__ == "__main__":
    key = jax.random.PRNGKey(0)
    k1, k2, k3, k4, k5, k6, k7, k8 = jax.random.split(key, 8)

    # deterministic synthetic parameters
    w_eta = 0.05 * jax.random.normal(k1, (N_STEP, D, LS), jnp.float32)
    b_eta = 0.01 * jax.random.normal(k2, (N_STEP, 1, LS), jnp.float32)
    w_sc = 0.05 * jax.random.normal(k3, (D, 2), jnp.float32)   # [:,0]=rho, [:,1]=mu
    b_sc = 0.01 * jax.random.normal(k4, (1, 2), jnp.float32)
    params = (w_eta, b_eta, w_sc, b_sc)

    # deterministic inputs
    phi0_batch = jax.random.uniform(k5, (B, LS), jnp.float32, -np.pi, np.pi)
    w_real = jax.random.normal(k6, (B, LW, M), jnp.float32)
    w_imag = jax.random.normal(k7, (B, LW, M), jnp.float32)
    w_M_batch = (w_real + 1j * w_imag).astype(jnp.complex64)
    y_M = jax.random.normal(k8, (LY, M), jnp.float32)

    out = srel_rep_ss_inter(phi0_batch, w_M_batch, y_M, params)
    out = jax.block_until_ready(out)

    # correctness check against a pure-numpy reference of the original module
    wr_np = np.real(np.asarray(w_M_batch)).transpose(0, 2, 1)
    wi_np = np.imag(np.asarray(w_M_batch)).transpose(0, 2, 1)
    y_np = np.asarray(y_M).T
    s_ref, mu_ref = reference_numpy(np.asarray(phi0_batch), wr_np, wi_np, y_np,
                                    w_eta, b_eta, w_sc, b_sc)
    np.testing.assert_allclose(np.asarray(out['s_stack_batch']), s_ref,
                               rtol=1e-3, atol=1e-3)
    np.testing.assert_allclose(np.asarray(out['mu_M_stack_batch']), mu_ref,
                               rtol=1e-3, atol=1e-3)

    assert out['s_stack_batch'].shape == (B, N_STEP + 1, LS)
    assert out['s_stack_batch'].dtype == jnp.complex64
    assert out['mu_M_stack_batch'].shape == (B, N_STEP, M)
    print("KERNEL_OK")
</pallas_src>

<mosaic_0001>
module attributes {stable_mosaic.version = 11 : i64} {
  func.func @srel_kernel(%arg0: i32, %arg1: memref<2x16xf32, #tpu.memory_space<vmem>>, %arg2: memref<8x24xf32, #tpu.memory_space<vmem>>, %arg3: memref<40x384xf32, #tpu.memory_space<vmem>>, %arg4: memref<2x128xf32, #tpu.memory_space<vmem>>) attributes {dimension_semantics = [#tpu.dimension_semantics<arbitrary>], iteration_bounds = array<i64: 1>, scalar_prefetch = 0 : i64, scratch_operands = 0 : i64, tpu.core_type = #tpu.core_type<tc>, window_params = [{pipeline_mode = #tpu.pipeline_mode<synchronous>, transform_indices = @transform_0, window_bounds = array<i64: 2, 16>}, {pipeline_mode = #tpu.pipeline_mode<synchronous>, transform_indices = @transform_1, window_bounds = array<i64: 8, 24>}, {pipeline_mode = #tpu.pipeline_mode<synchronous>, transform_indices = @transform_2, window_bounds = array<i64: 40, 384>}, {pipeline_mode = #tpu.pipeline_mode<synchronous>, transform_indices = @transform_3, window_bounds = array<i64: 2, 128>}]} {
    %c0 = arith.constant 0 : index
    %c0_0 = arith.constant 0 : index
    %0 = vector.load %arg1[%c0, %c0_0] : memref<2x16xf32, #tpu.memory_space<vmem>>, vector<2x16xf32>
    %c0_1 = arith.constant 0 : index
    %c0_2 = arith.constant 0 : index
    %1 = vector.load %arg2[%c0_1, %c0_2] : memref<8x24xf32, #tpu.memory_space<vmem>>, vector<8x24xf32>
    %c16 = arith.constant 16 : index
    %c0_3 = arith.constant 0 : index
    %2 = vector.load %arg3[%c16, %c0_3] : memref<40x384xf32, #tpu.memory_space<vmem>>, vector<24x384xf32>
    %cst = arith.constant dense<0.000000e+00> : vector<8x384xf32>
    %3 = tpu.matmul %1, %2, %cst {dimension_numbers = #tpu.dot_dimension_numbers<[1], [0], [0], [1], [0, 0, 1, 1], [], []>} : vector<8x24xf32>, vector<24x384xf32>, vector<8x384xf32> -> vector<8x384xf32>
    %4 = math.cos %0 : vector<2x16xf32>
    %cst_4 = arith.constant 1.000000e+00 : f32
    %5 = vector.broadcast %cst_4 : f32 to vector<2x16xf32>
    %6 = arith.mulf %5, %4 : vector<2x16xf32>
    %c0_5 = arith.constant 0 : index
    %c0_6 = arith.constant 0 : index
    %7 = vector.load %arg3[%c0_5, %c0_6] : memref<40x384xf32, #tpu.memory_space<vmem>>, vector<16x128xf32>
    %cst_7 = arith.constant dense<0.000000e+00> : vector<2x128xf32>
    %8 = tpu.matmul %6, %7, %cst_7 {dimension_numbers = #tpu.dot_dimension_numbers<[1], [0], [0], [1], [0, 0, 1, 1], [], []>} : vector<2x16xf32>, vector<16x128xf32>, vector<2x128xf32> -> vector<2x128xf32>
    %9 = vector.extract_strided_slice %3 {offsets = [0, 0], sizes = [8, 128], strides = [1, 1]} : vector<8x384xf32> to vector<8x128xf32>
    %10 = vector.shape_cast %9 : vector<8x128xf32> to vector<2x4x128xf32>
    %11 = vector.shape_cast %8 : vector<2x128xf32> to vector<2x1x128xf32>
    %12 = vector.broadcast %11 : vector<2x1x128xf32> to vector<2x4x128xf32>
    %13 = arith.addf %10, %12 : vector<2x4x128xf32>
    %14 = vector.extract_strided_slice %13 {offsets = [0, 0, 0], sizes = [2, 4, 8], strides = [1, 1, 1]} : vector<2x4x128xf32> to vector<2x4x8xf32>
    %15 = vector.extract_strided_slice %13 {offsets = [0, 0, 8], sizes = [2, 4, 2], strides = [1, 1, 1]} : vector<2x4x128xf32> to vector<2x4x2xf32>
    %16 = arith.negf %15 : vector<2x4x2xf32>
    %17 = math.exp %16 : vector<2x4x2xf32>
    %cst_8 = arith.constant 1.000000e+00 : f32
    %18 = vector.broadcast %cst_8 : f32 to vector<2x4x2xf32>
    %19 = arith.addf %18, %17 : vector<2x4x2xf32>
    %20 = arith.divf %18, %19 : vector<2x4x2xf32>
    %21 = vector.extract_strided_slice %20 {offsets = [0, 0, 1], sizes = [2, 4, 1], strides = [1, 1, 1]} : vector<2x4x2xf32> to vector<2x4x1xf32>
    %22 = vector.shape_cast %21 : vector<2x4x1xf32> to vector<2x4xf32>
    %23 = vector.extract_strided_slice %20 {offsets = [0, 0, 0], sizes = [2, 4, 1], strides = [1, 1, 1]} : vector<2x4x2xf32> to vector<2x4x1xf32>
    %24 = vector.extract_strided_slice %20 {offsets = [0, 0, 1], sizes = [2, 4, 1], strides = [1, 1, 1]} : vector<2x4x2xf32> to vector<2x4x1xf32>
    %25 = arith.mulf %23, %24 : vector<2x4x1xf32>
    %26 = vector.broadcast %25 : vector<2x4x1xf32> to vector<2x4x8xf32>
    %27 = arith.mulf %26, %14 : vector<2x4x8xf32>
    %cst_9 = arith.constant dense<0.000000e+00> : vector<2x8xf32>
    %28 = vector.multi_reduction <add>, %27, %cst_9 [1] : vector<2x4x8xf32> to vector<2x8xf32>
    %29 = tpu.concatenate %28, %28 in 1 : vector<2x8xf32>, vector<2x8xf32> -> vector<2x16xf32>
    %30 = arith.subf %0, %29 : vector<2x16xf32>
    %31 = math.cos %30 : vector<2x16xf32>
    %cst_10 = arith.constant 1.000000e+00 : f32
    %32 = vector.broadcast %cst_10 : f32 to vector<2x16xf32>
    %33 = arith.mulf %32, %31 : vector<2x16xf32>
    %c0_11 = arith.constant 0 : index
    %c128 = arith.constant 128 : index
    %34 = vector.load %arg3[%c0_11, %c128] : memref<40x384xf32, #tpu.memory_space<vmem>>, vector<16x128xf32>
    %cst_12 = arith.constant dense<0.000000e+00> : vector<2x128xf32>
    %35 = tpu.matmul %33, %34, %cst_12 {dimension_numbers = #tpu.dot_dimension_numbers<[1], [0], [0], [1], [0, 0, 1, 1], [], []>} : vector<2x16xf32>, vector<16x128xf32>, vector<2x128xf32> -> vector<2x128xf32>
    %36 = vector.extract_strided_slice %3 {offsets = [0, 128], sizes = [8, 128], strides = [1, 1]} : vector<8x384xf32> to vector<8x128xf32>
    %37 = vector.shape_cast %36 : vector<8x128xf32> to vector<2x4x128xf32>
    %38 = vector.shape_cast %35 : vector<2x128xf32> to vector<2x1x128xf32>
    %39 = vector.broadcast %38 : vector<2x1x128xf32> to vector<2x4x128xf32>
    %40 = arith.addf %37, %39 : vector<2x4x128xf32>
    %41 = vector.extract_strided_slice %40 {offsets = [0, 0, 0], sizes = [2, 4, 8], strides = [1, 1, 1]} : vector<2x4x128xf32> to vector<2x4x8xf32>
    %42 = vector.extract_strided_slice %40 {offsets = [0, 0, 8], sizes = [2, 4, 2], strides = [1, 1, 1]} : vector<2x4x128xf32> to vector<2x4x2xf32>
    %43 = arith.negf %42 : vector<2x4x2xf32>
    %44 = math.exp %43 : vector<2x4x2xf32>
    %cst_13 = arith.constant 1.000000e+00 : f32
    %45 = vector.broadcast %cst_13 : f32 to vector<2x4x2xf32>
    %46 = arith.addf %45, %44 : vector<2x4x2xf32>
    %47 = arith.divf %45, %46 : vector<2x4x2xf32>
    %48 = vector.extract_strided_slice %47 {offsets = [0, 0, 1], sizes = [2, 4, 1], strides = [1, 1, 1]} : vector<2x4x2xf32> to vector<2x4x1xf32>
    %49 = vector.shape_cast %48 : vector<2x4x1xf32> to vector<2x4xf32>
    %50 = vector.extract_strided_slice %47 {offsets = [0, 0, 0], sizes = [2, 4, 1], strides = [1, 1, 1]} : vector<2x4x2xf32> to vector<2x4x1xf32>
    %51 = vector.extract_strided_slice %47 {offsets = [0, 0, 1], sizes = [2, 4, 1], strides = [1, 1, 1]} : vector<2x4x2xf32> to vector<2x4x1xf32>
    %52 = arith.mulf %50, %51 : vector<2x4x1xf32>
    %53 = vector.broadcast %52 : vector<2x4x1xf32> to vector<2x4x8xf32>
    %54 = arith.mulf %53, %41 : vector<2x4x8xf32>
    %cst_14 = arith.constant dense<0.000000e+00> : vector<2x8xf32>
    %55 = vector.multi_reduction <add>, %54, %cst_14 [1] : vector<2x4x8xf32> to vector<2x8xf32>
    %56 = tpu.concatenate %55, %55 in 1 : vector<2x8xf32>, vector<2x8xf32> -> vector<2x16xf32>
    %57 = arith.subf %30, %56 : vector<2x16xf32>
    %58 = math.cos %57 : vector<2x16xf32>
    %cst_15 = arith.constant 1.000000e+00 : f32
    %59 = vector.broadcast %cst_15 : f32 to vector<2x16xf32>
    %60 = arith.mulf %59, %58 : vector<2x16xf32>
    %c0_16 = arith.constant 0 : index
    %c256 = arith.constant 256 : index
    %61 = vector.load %arg3[%c0_16, %c256] : memref<40x384xf32, #tpu.memory_space<vmem>>, vector<16x128xf32>
    %cst_17 = arith.constant dense<0.000000e+00> : vector<2x128xf32>
    %62 = tpu.matmul %60, %61, %cst_17 {dimension_numbers = #tpu.dot_dimension_numbers<[1], [0], [0], [1], [0, 0, 1, 1], [], []>} : vector<2x16xf32>, vector<16x128xf32>, vector<2x128xf32> -> vector<2x128xf32>
    %63 = vector.extract_strided_slice %3 {offsets = [0, 256], sizes = [8, 128], strides = [1, 1]} : vector<8x384xf32> to vector<8x128xf32>
    %64 = vector.shape_cast %63 : vector<8x128xf32> to vector<2x4x128xf32>
    %65 = vector.shape_cast %62 : vector<2x128xf32> to vector<2x1x128xf32>
    %66 = vector.broadcast %65 : vector<2x1x128xf32> to vector<2x4x128xf32>
    %67 = arith.addf %64, %66 : vector<2x4x128xf32>
    %68 = vector.extract_strided_slice %67 {offsets = [0, 0, 0], sizes = [2, 4, 8], strides = [1, 1, 1]} : vector<2x4x128xf32> to vector<2x4x8xf32>
    %69 = vector.extract_strided_slice %67 {offsets = [0, 0, 8], sizes = [2, 4, 2], strides = [1, 1, 1]} : vector<2x4x128xf32> to vector<2x4x2xf32>
    %70 = arith.negf %69 : vector<2x4x2xf32>
    %71 = math.exp %70 : vector<2x4x2xf32>
    %cst_18 = arith.constant 1.000000e+00 : f32
    %72 = vector.broadcast %cst_18 : f32 to vector<2x4x2xf32>
    %73 = arith.addf %72, %71 : vector<2x4x2xf32>
    %74 = arith.divf %72, %73 : vector<2x4x2xf32>
    %75 = vector.extract_strided_slice %74 {offsets = [0, 0, 1], sizes = [2, 4, 1], strides = [1, 1, 1]} : vector<2x4x2xf32> to vector<2x4x1xf32>
    %76 = vector.shape_cast %75 : vector<2x4x1xf32> to vector<2x4xf32>
    %77 = vector.extract_strided_slice %74 {offsets = [0, 0, 0], sizes = [2, 4, 1], strides = [1, 1, 1]} : vector<2x4x2xf32> to vector<2x4x1xf32>
    %78 = vector.extract_strided_slice %74 {offsets = [0, 0, 1], sizes = [2, 4, 1], strides = [1, 1, 1]} : vector<2x4x2xf32> to vector<2x4x1xf32>
    %79 = arith.mulf %77, %78 : vector<2x4x1xf32>
    %80 = vector.broadcast %79 : vector<2x4x1xf32> to vector<2x4x8xf32>
    %81 = arith.mulf %80, %68 : vector<2x4x8xf32>
    %cst_19 = arith.constant dense<0.000000e+00> : vector<2x8xf32>
    %82 = vector.multi_reduction <add>, %81, %cst_19 [1] : vector<2x4x8xf32> to vector<2x8xf32>
    %83 = tpu.concatenate %82, %82 in 1 : vector<2x8xf32>, vector<2x8xf32> -> vector<2x16xf32>
    %84 = arith.subf %57, %83 : vector<2x16xf32>
    %85 = math.cos %84 : vector<2x16xf32>
    %cst_20 = arith.constant 1.000000e+00 : f32
    %86 = vector.broadcast %cst_20 : f32 to vector<2x16xf32>
    %87 = arith.mulf %86, %85 : vector<2x16xf32>
    %88 = tpu.concatenate %6, %33, %60, %87 in 1 : vector<2x16xf32>, vector<2x16xf32>, vector<2x16xf32>, vector<2x16xf32> -> vector<2x64xf32>
    %89 = tpu.concatenate %22, %49, %76 in 1 : vector<2x4xf32>, vector<2x4xf32>, vector<2x4xf32> -> vector<2x12xf32>
    %cst_21 = arith.constant 0.000000e+00 : f32
    %90 = vector.broadcast %cst_21 : f32 to vector<2x52xf32>
    %91 = tpu.concatenate %88, %89, %90 in 1 : vector<2x64xf32>, vector<2x12xf32>, vector<2x52xf32> -> vector<2x128xf32>
    %c0_22 = arith.constant 0 : index
    %c0_23 = arith.constant 0 : index
    %92 = vector.load %arg4[%c0_22, %c0_23] : memref<2x128xf32, #tpu.memory_space<vmem>>, vector<2x128xf32>
    tpu.vector_store %arg4[%c0_22, %c0_23], %91 {strides = array<i32>} : memref<2x128xf32, #tpu.memory_space<vmem>>, vector<2x128xf32>,
    return
  }
  func.func @transform_0(%arg0: i32) -> (i32, i32) {
    %c0_i32 = arith.constant 0 : i32
    %c0_i32_0 = arith.constant 0 : i32
    %c0_i32_1 = arith.constant 0 : i32
    return %c0_i32, %c0_i32_0 : i32, i32
  }
  func.func @transform_1(%arg0: i32) -> (i32, i32) {
    %c0_i32 = arith.constant 0 : i32
    %c0_i32_0 = arith.constant 0 : i32
    %c0_i32_1 = arith.constant 0 : i32
    return %c0_i32, %c0_i32_0 : i32, i32
  }
  func.func @transform_2(%arg0: i32) -> (i32, i32) {
    %c0_i32 = arith.constant 0 : i32
    %c0_i32_0 = arith.constant 0 : i32
    %c0_i32_1 = arith.constant 0 : i32
    return %c0_i32, %c0_i32_0 : i32, i32
  }
  func.func @transform_3(%arg0: i32) -> (i32, i32) {
    %c0_i32 = arith.constant 0 : i32
    %c0_i32_0 = arith.constant 0 : i32
    %c0_i32_1 = arith.constant 0 : i32
    return %c0_i32, %c0_i32_0 : i32, i32
  }
}

</mosaic_0001>

<bundles_post_ra>
// kernel: tpu_custom_call.1
= control target key start
LH: loop header
LB: loop body
LE: loop exit
PB: predicated region body
PF: predicated region fallthrough
CT: control target
= control target key end

     0   :  { %8 = vsyncpa [#allocation3], 0  ;;  %s1897_s0 = inlined_call_operand.hbm [shape: f32[2,16], index: 0, kind: input, shape index: {}]   ;;  %s1898_s1 = inlined_call_operand.hbm [shape: f32[8,24], index: 1, kind: input, shape index: {}]   ;;  %s1899_s2 = inlined_call_operand.hbm [shape: f32[40,384], index: 2, kind: input, shape index: {}]   ;;  %s1900_s3 = inlined_call_operand.hbm [shape: f32[2,128], index: 3, kind: output, shape index: {}]  }
   0x1   :  { %9 = vsyncpa [#allocation6], 0 }
   0x2   :  { %10 = vsyncpa [#allocation4], 0  ;;  %s1536_s12 = smov [#allocation5]   ;;  %s1537_s14 = smov [#allocation2]  }
   0x3   :  { %s27_s13 = sshll.u32 %s1536_s12, 4  ;;  %s17_s15 = sshll.u32 %s1537_s14, 4  ;;  %s28_s13 = int_to_ptr.vmem [resolvable:$true] %s27_s13  ;;  %s18_s15 = int_to_ptr.vmem [resolvable:$true] %s17_s15 }
   0x4   :  { %s1442_s18 = scalar_lea.hbm %s1898_s1, 128 }
   0x5   :  { %p1443_p0 = scmp.ne.s32.totalorder %s1898_s1, %s1442_s18  ;;  %p1446_p1 = scmp.lt.u32.totalorder %s1442_s18, %s1898_s1 }
   0x7   :  { %p1448_p2 = pnand %p1446_p1, %p1443_p0 }
   0x9   :  { %1451 = shalt.err (!%p1448_p2)
}
   0xa   :  { %s1452_s23 = scalar_lea.vmem %s28_s13, 128  ;;  %p1457_p4 = scmp.lt.s32.totalorder %s28_s13, %s28_s13 }
   0xb   :  { %p1453_p3 = scmp.ne.s32.totalorder %s28_s13, %s1452_s23  ;;  %p1458_p5 = scmp.lt.s32.totalorder %s1452_s23, %s1452_s23 }
   0xd   :  { %p1459_p6 = por %p1458_p5, %p1457_p4 }
   0xf   :  { %p1460_p7 = pnand %p1459_p6, %p1453_p3 }
  0x11   :  { %1463 = shalt.err (!%p1460_p7)
}
  0x12   :  { %30 = dma.hbm_to_vmem [thread:$0]  %s1898_s1, 128, %s28_s13, [#allocation6]  }
  0x13   :  { %s1464_s28 = scalar_lea.hbm %s1897_s0, 32 }
  0x14   :  { %p1465_p8 = scmp.ne.s32.totalorder %s1897_s0, %s1464_s28  ;;  %p1468_p9 = scmp.lt.u32.totalorder %s1464_s28, %s1897_s0 }
  0x16   :  { %p1470_p10 = pnand %p1468_p9, %p1465_p8 }
  0x18   :  { %1473 = shalt.err (!%p1470_p10)
}
  0x19   :  { %s1474_s6 = scalar_lea.vmem %s18_s15, 32  ;;  %p1479_p12 = scmp.lt.s32.totalorder %s18_s15, %s18_s15 }
  0x1a   :  { %p1475_p11 = scmp.ne.s32.totalorder %s18_s15, %s1474_s6  ;;  %p1480_p13 = scmp.lt.s32.totalorder %s1474_s6, %s1474_s6 }
  0x1c   :  { %p1481_p0 = por %p1480_p13, %p1479_p12 }
  0x1e   :  { %p1482_p1 = pnand %p1481_p0, %p1475_p11 }
  0x20   :  { %1485 = shalt.err (!%p1482_p1)
}
  0x21   :  { %20 = dma.hbm_to_vmem [thread:$0]  %s1897_s0, 32, %s18_s15, [#allocation3]  }
  0x22   :  { %s1538_s8 = smov [#allocation7]   ;;  %s1486_s12 = scalar_lea.hbm %s1899_s2, 1920 }
  0x23   :  { %s36_s9 = sshll.u32 %s1538_s8, 4  ;;  %p1487_p2 = scmp.ne.s32.totalorder %s1899_s2, %s1486_s12  ;;  %s37_s9 = int_to_ptr.vmem [resolvable:$true] %s36_s9 }
  0x24   :  { %p1490_p3 = scmp.lt.u32.totalorder %s1486_s12, %s1899_s2 }
  0x26   :  { %p1492_p4 = pnand %p1490_p3, %p1487_p2 }
  0x28   :  { %1495 = shalt.err (!%p1492_p4)
}
  0x29   :  { %s1496_s18 = scalar_lea.vmem %s37_s9, 1920  ;;  %p1501_p6 = scmp.lt.s32.totalorder %s37_s9, %s37_s9 }
  0x2a   :  { %p1497_p5 = scmp.ne.s32.totalorder %s37_s9, %s1496_s18  ;;  %p1502_p7 = scmp.lt.s32.totalorder %s1496_s18, %s1496_s18 }
  0x2c   :  { %p1503_p8 = por %p1502_p7, %p1501_p6 }
  0x2e   :  { %p1504_p9 = pnand %p1503_p8, %p1497_p5 }
  0x30   :  { %1507 = shalt.err (!%p1504_p9)
}
  0x31   :  { %s1539_s0 = smov 384   ;;  %s1540_s15 = smov 24  }
  0x32   :  { %42 = dma.hbm_to_vmem [thread:$0]  %s1899_s2, 1920, %s37_s9, [#allocation6], %s1539_s0, %s1539_s0, %s1540_s15  }
  0x33   :  { %1530 = dma.done.wait [#allocation3], 32  }
  0x34   :  { %1531 = vsyncadd [#allocation3], 4294967264 }
  0x35   :  { %1532 = dma.done.wait [#allocation6], 2048  }
  0x36   :  { %1533 = vsyncadd [#allocation6], 4294965248  ;;  %v1541_v0 = vmov 0.0   ;;  %v1542_v1 = vmov 0.0|0.0   ;;  %vm1543_vm0 = vmmov 0   ;;  %v55_v2 = vld [vmem:[#allocation7 + $0x38] sm:$0xff] }
  0x37   :  { %131 = vmatprep.mubr.f32.mxu0 %v1541_v0  ;;  %1345 = vmatprep.subr.bf16.mxu1 %v1542_v1  ;;  %v58_v3 = vld [vmem:[#allocation7 + $0x50] sm:$0xff]  ;;  %v57_v6 = vld [vmem:[#allocation7 + $0x48] sm:$0xff]  ;;  %v311_v9 = vld [vmem:[#allocation7] sm:$0xff]  ;;  %vm63_vm1 = vcmask 195584   ;;  %v1544_v26 = vmov 683565275  }
  0x38   :  { %1317 = vmatprep.mubr.msk.f32.mxu1 %vm1543_vm0, %v1541_v0  ;;  %v54_v4 = vld [vmem:[#allocation7 + $0x30] sm:$0xff]  ;;  %v1341_v5 = vpack.c.bf16 %v58_v3, %v55_v2  ;;  %v61_v8 = vld [vmem:[#allocation7 + $0x68] sm:$0xff]  ;;  %v312_v10 = vld [vmem:[#allocation7 + $0x18] sm:$0xff]  ;;  %v1545_v28 = vmov 2475754826   ;;  %vm313_vm15 = vcmask 130048  }
  0x39   :  { %v1343_v7 = vpack.c.bf16 %v57_v6, %v54_v4  ;;  %v1621_v11 = vld [vmem:[#allocation2] sm:$0x3]  ;;  %v60_v13 = vld [vmem:[#allocation7 + $0x60] sm:$0xff]  ;;  %v1624_v14 = vld [vmem:[#allocation5] sm:$0xff]  ;;  %v1349_v15 = vpack.c.bf16 %v312_v10, %v311_v9  ;;  %v1546_v30 = vmov 2131351028  }
  0x3a   :  { %1342 = vmatprep.subr.bf16.mxu0 %v1341_v5  ;;  %v211_v12 = vand.u32 2139095040, %v1621_v11  ;;  %v208_v17 = vand.u32 2147483647, %v1621_v11  ;;  %v1547_v32 = vmov 2102212464   ;;  %vm210_vm9 = vcmp.lt.s32.totalorder %v1621_v11, 0 }
  0x3b   :  { %1344 = vmatpush1.bf16.msra.mxu0 %v1343_v7  ;;  %v1548_v34 = vmov 920167782   ;;  %v1549_v41 = vmov 1326507024   ;;  %vm300_vm14 = vweird.f32 %v1621_v11  ;;  %s1552_s2 = smov 127   ;;  %s1554_s21 = smov 8  }
  0x3c   :  { %71 = vmatprep.subr.mxu0 %v61_v8  ;;  %v212_v16 = vshrl.u32 %v211_v12, 23  ;;  %v215_v20 = vand.u32 8388607, %v208_v17  ;;  %vm209_vm10 = vcmp.le.f32.partialorder %v208_v17, 0.7853982  ;;  %s1556_s22 = smov 32  }
  0x3d   :  { %s1557_s23 = smov 16   ;;  %s1558_s24 = smov 64  }
  0x3e   :  { %v1273_v18 = vadd.s32 4294967169, %v212_v16  ;;  %v216_v23 = vor.u32 8388608, %v215_v20  ;;  %s1559_s25 = smov 48   ;;  %s1560_s26 = smov [#allocation8]  }
  0x3f   :  { %72 = vmatpush1.msra.mxu0 %v60_v13  ;;  %s1261_s27 = sshll.u32 %s1560_s26, 4  ;;  %s1262_s27 = int_to_ptr.vmem [resolvable:$true] %s1261_s27 }
  0x40   :  { %1271 = vmatmul.mubr.msk.f32.vlgmr.msra.gmra.mrb[0].mxu0 %vm63_vm1, %v1624_v14  ;;  %1348 = vmatprep.subr.bf16.mxu0 %v1542_v1  ;;  %v218_v19 = vadd.s32 1, %v1273_v18  ;;  %v256_v43 = vshll.u32 %v216_v23, 8  ;;  %s1508_s28 = scalar_lea.vmem %s1262_s27, 32  ;;  %p1513_p11 = scmp.lt.s32.totalorder %s1262_s27, %s1262_s27 }
  0x41   :  { %1350 = vmatpush3.bf16.msra.mxu0 %v1349_v15  ;;  %1324 = vmatprep.mubr.msk.f32.mxu0 %vm1543_vm0, %v1541_v0  ;;  %p1509_p10 = scmp.ne.s32.totalorder %s1262_s27, %s1508_s28  ;;  %p1514_p12 = scmp.lt.s32.totalorder %s1508_s28, %s1508_s28 }
  0x42   :  { %1354 = vmatprep.subr.bf16.mxu0 %v1542_v1  ;;  %vm219_vm2 = vcmp.gt.s32.totalorder %v218_v19, 0 }
  0x43   :  { %v220_v21 = vsel %vm219_vm2, %v218_v19, 0  ;;  %vm473_vm2 = vcmask 60416   ;;  %p1515_p13 = por %p1514_p12, %p1513_p11 }
  0x44   :  { %v222_v22 = vand.u32 31, %v220_v21  ;;  %v221_v24 = vshrl.u32 %v220_v21, 5 }
  0x45   :  { %p1516_p0 = pnand %p1515_p13, %p1509_p10 }
  0x46   :  { %v223_v25 = vsub.s32 32, %v222_v22  ;;  %v225_v27 = vshll.u32 %v1544_v26, %v222_v22  ;;  %v228_v29 = vshll.u32 %v1545_v28, %v222_v22  ;;  %v231_v31 = vshll.u32 %v1546_v30, %v222_v22 }
  0x47   :  { %v234_v33 = vshll.u32 %v1547_v32, %v222_v22  ;;  %v237_v35 = vshll.u32 %v1548_v34, %v222_v22  ;;  %vm240_vm3 = vcmp.lt.s32.totalorder %v221_v24, 1  ;;  %vm243_vm4 = vcmp.lt.s32.totalorder %v221_v24, 4 }
  0x48   :  { %v224_v36 = vshrl.u32 %v1544_v26, %v223_v25  ;;  %v226_v37 = vshrl.u32 %v1545_v28, %v223_v25  ;;  %v229_v38 = vshrl.u32 %v1546_v30, %v223_v25  ;;  %v232_v39 = vshrl.u32 %v1547_v32, %v223_v25 }
  0x49   :  { %v235_v40 = vshrl.u32 %v1548_v34, %v223_v25  ;;  %v238_v42 = vshrl.u32 %v1549_v41, %v223_v25  ;;  %vm241_vm5 = vcmp.lt.s32.totalorder %v221_v24, 2  ;;  %vm242_vm6 = vcmp.lt.s32.totalorder %v221_v24, 3 }
  0x4a   :  { %v227_v44 = vor.u32 %v226_v37, %v225_v27  ;;  %v230_v45 = vor.u32 %v229_v38, %v228_v29  ;;  %v233_v46 = vor.u32 %v232_v39, %v231_v31 }
  0x4b   :  { %v236_v47 = vor.u32 %v235_v40, %v234_v33  ;;  %v239_v48 = vor.u32 %v238_v42, %v237_v35 }
  0x4c   :  { %v244_v49 = vsel %vm240_vm3, %v224_v36, %v227_v44  ;;  %v245_v50 = vsel %vm243_vm4, %v233_v46, 2102212464  ;;  %v248_v51 = vsel %vm240_vm3, %v227_v44, %v230_v45  ;;  %v252_v52 = vsel %vm240_vm3, %v230_v45, %v233_v46 }
  0x4d   :  { %v246_v53 = vsel %vm242_vm6, %v230_v45, %v245_v50  ;;  %v249_v54 = vsel %vm243_vm4, %v236_v47, 920167782  ;;  %v253_v55 = vsel %vm243_vm4, %v239_v48, 1326507024  ;;  %vm490_vm3 = vcmask 1041409  }
  0x4e   :  { %v250_v56 = vsel %vm242_vm6, %v233_v46, %v249_v54  ;;  %v254_v57 = vsel %vm242_vm6, %v236_v47, %v253_v55  ;;  %v247_v58 = vsel %vm241_vm5, %v244_v49, %v246_v53  ;;  %v1550_v53 = vmov 1966171168  }
  0x4f   :  { %v251_v59 = vsel %vm241_vm5, %v248_v51, %v250_v56  ;;  %v255_v60 = vsel %vm241_vm5, %v252_v52, %v254_v57  ;;  %v263_v3 = vmul.u32 %v256_v43, %v247_v58  ;;  %v392_v54 = vunpack.c.l.s4 %v1550_v53 }
  0x50   :  { %v1646_v61 = vmul.u32.u64.low %v256_v43, %v255_v60  ;;  %v1647_v62 = vmul.u32.u64.high %v256_v43, %v255_v60, %v1646_v61  ;;  %v1649_v63 = vmul.u32.u64.low %v256_v43, %v251_v59  ;;  %v1650_v2 = vmul.u32.u64.high %v256_v43, %v251_v59, %v1649_v63 }
  0x51   :  { %v394_v55 = vlaneseq  ;;  %v393_v56 = vunpack.c.0.s8 %v392_v54  ;;  %vm496_vm4 = vcmask 64512  }
  0x52   :  { %vm265_vm7 = vc.u32 %v1647_v62, %v1649_v63  ;;  %v266_v4 = vadd.s32 1, %v1650_v2  ;;  %v264_v18 = vadd.s32 %v1649_v63, %v1647_v62 }
  0x53   :  { %v1670_v57 = vshrl.u32 %v394_v55, 7 }
  0x54   :  { %v267_v5 = vsel %vm265_vm7, %v266_v4, %v1650_v2 }
  0x55   :  { %v268_v6 = vadd.s32 %v267_v5, %v263_v3  ;;  %v1673_v58 = vsub.s32 %v393_v56, %v1670_v57  ;;  %v1677_v61 = vsub.s32 0, %v1670_v57 }
  0x57   :  { %v269_v7 = vadd.s32 536870912, %v268_v6 }
  0x59   :  { %v270_v8 = vshrl.u32 %v269_v7, 30 }
  0x5b   :  { %v271_v9 = vshll.u32 %v270_v8, 30  ;;  %v294_v37 = vsub.s32 4, %v270_v8 }
  0x5d   :  { %v272_v10 = vsub.s32 %v268_v6, %v271_v9  ;;  %v295_v40 = vsel %vm210_vm9, %v294_v37, %v270_v8 }
  0x5e   :  { %v297_v42 = vsel %vm209_vm10, 0, %v295_v40 }
  0x5f   :  { %v274_v12 = vsub.s32 0, %v272_v10  ;;  %v301_v43 = vand.u32 3, %v297_v42 }
  0x61   :  { %v1274_v13 = vmin.u32 %v274_v12, %v272_v10  ;;  %vm306_vm11 = vcmp.eq.s32.totalorder %v301_v43, 2  ;;  %vm303_vm12 = vcmp.eq.s32.totalorder %v301_v43, 0  ;;  %vm302_vm13 = vcmp.lt.s32.totalorder %v301_v43, 2 }
  0x63   :  { %v276_v15 = vclz %v1274_v13 }
  0x65   :  { %v1275_v16 = vadd.s32 4294967294, %v276_v15 }
  0x67   :  { %vm1276_vm8 = vcmp.lt.s32.totalorder %v1275_v16, 0 }
  0x68   :  { %v279_v19 = vsel %vm1276_vm8, 0, %v1275_v16  ;;  %v1551_v16 = vmov 8  }
  0x69   :  { %v280_v20 = vsub.s32 32, %v279_v19  ;;  %v281_v21 = vshll.u32 %v272_v10, %v279_v19  ;;  %v284_v22 = vsub.s32 4294967266, %v279_v19  ;;  %1398 = vset.pattern.permute.xlu1 %v1551_v16  ;;  %1399 = vset.pattern.permute.xlu0 %v1551_v16 }
  0x6b   :  { %v282_v23 = vshrl.u32 %v264_v18, %v280_v20  ;;  %v285_v24 = vadd.s32 127, %v284_v22 }
  0x6d   :  { %v283_v25 = vor.u32 %v282_v23, %v281_v21  ;;  %v286_v27 = vshll.u32 %v285_v24, 23 }
  0x6f   :  { %v287_v29 = vor.u32 4788187, %v286_v27  ;;  %v290_v31 = vcvt.s32.f32 %v283_v25  ;;  %v1553_v25 = vmov 839922192  }
  0x70   :  { %v453_v27 = vunpack.c.l.s4 %v1553_v25 }
  0x71   :  { %v288_v33 = vand.u32 2147483647, %v287_v29 }
  0x72   :  { %v454_v29 = vunpack.c.0.s8 %v453_v27 }
  0x73   :  { %v291_v35 = vmul.f32 %v290_v31, %v288_v33 }
  0x74   :  { %v1694_v31 = vsub.s32 %v454_v29, %v1670_v57 }
  0x75   :  { %v292_v36 = vxor.u32 2147483648, %v291_v35 }
  0x77   :  { %v293_v38 = vsel %vm210_vm9, %v292_v36, %v291_v35 }
  0x78   :  { %v296_v39 = vsel %vm209_vm10, %v1621_v11, %v293_v38 }
  0x79   :  { %1402 = vcosq.f32 %v296_v39 }
  0x7a   :  { %1404 = vsinq.f32 %v296_v39 }
  0x83   :  { %v1403_v44 = vpop.eup %1402 }
  0x84   :  { %v1405_v45 = vpop.eup %1404  ;;  %v307_v46 = vxor.u32 2147483648, %v1403_v44 }
  0x85   :  { %v304_v47 = vxor.u32 2147483648, %v1405_v45 }
  0x86   :  { %v308_v17 = vsel %vm306_vm11, %v307_v46, %v1405_v45 }
  0x87   :  { %v305_v48 = vsel %vm303_vm12, %v1403_v44, %v304_v47 }
  0x88   :  { %v309_v49 = vsel %vm302_vm13, %v305_v48, %v308_v17 }
  0x89   :  { %v1661_v50 = vsel %vm300_vm14, nan, %v309_v49 }
  0x8a   :  { %1325 = vmatmul.mubr.msk.f32.vlgmr.msra.gmra.mrb[2].mxu0 %vm313_vm15, %v1661_v50 }
  0x8b   :  { %1338 = vmatprep.mubr.msk.f32.mxu0 %vm1543_vm0, %v1541_v0 }
 0x113   :  { %v133_v51 = vpop.f32.mrb[0].mxu0 }
 0x114   :  { %v1667_v52 = vpop.f32.mrb[1].mxu0  ;;  %v388_v5 = vcombine.high %v133_v51, %v133_v51 }
 0x15d   :  { %v383_v59 = vpop.f32.mrb[2].mxu0 }
 0x15e   :  { %v397_v60 = vrot.slane %v383_v59, %v1673_v58  ;;  %v1326_v62 = vpop.f32.mrb[3].mxu0 }
 0x15f   :  { %v59_v62 = vld [vmem:[#allocation7 + $0x58] sm:$0xff] }
 0x160   :  { %v398_v63 = vcombine.high %v397_v60, %v397_v60  ;;  %v405_v2 = vrot.slane %v397_v60, %v1673_v58  ;;  %v56_v60 = vld [vmem:[#allocation7 + $0x40] sm:$0xff] }
 0x162   :  { %v412_v3 = vrot.slane %v398_v63, %v1673_v58  ;;  %v416_v4 = vrot.slane %v405_v2, %v1677_v61  ;;  %v1346_v63 = vpack.c.bf16 %v59_v62, %v56_v60  ;;  %v602_v2 = vld [vmem:[#allocation7 + $0x8] sm:$0xff] }
 0x164   :  { %v420_v6 = vrot.slane %v412_v3, %v1677_v61  ;;  %v423_v7 = vadd.f32 %v416_v4, %v133_v51  ;;  %v603_v3 = vld [vmem:[#allocation7 + $0x20] sm:$0xff]  ;;  %1347 = vmatpush3.bf16.msra.mxu1 %v1346_v63  ;;  %v62_v4 = vld [vmem:[#allocation7 + $0x70] sm:$0xff] }
 0x165   :  { %1315 = vmatprep.subr.mxu1 %v1541_v0 }
 0x166   :  { %v424_v8 = vadd.f32 %v420_v6, %v388_v5  ;;  %v1278_v9 = vmul.f32 -1.442695, %v423_v7  ;;  %v1352_v5 = vpack.c.bf16 %v603_v3, %v602_v2 }
 0x168   :  { %1406 = vpow2.f32 %v1278_v9  ;;  %v1279_v10 = vmul.f32 -1.442695, %v424_v8  ;;  %1316 = vmatpush3.msra.mxu1 %v62_v4 }
 0x169   :  { %1318 = vmatmul.mubr.msk.f32.vlgmr.msra.gmra.mrb[0].mxu1 %vm63_vm1, %v1624_v14  ;;  %1351 = vmatprep.subr.bf16.mxu1 %v1542_v1 }
 0x16a   :  { %1408 = vpow2.f32 %v1279_v10  ;;  %1353 = vmatpush3.bf16.msra.mxu1 %v1352_v5  ;;  %1331 = vmatprep.mubr.msk.f32.mxu1 %vm1543_vm0, %v1541_v0 }
 0x172   :  { %v1407_v12 = vpop.eup %1406 }
 0x173   :  { %v431_v13 = vadd.f32 1.0, %v1407_v12 }
 0x174   :  { %v1409_v15 = vpop.eup %1408 }
 0x175   :  { %v432_v18 = vadd.f32 1.0, %v1409_v15  ;;  %1410 = vrcp.f32 %v431_v13 }
 0x177   :  { %1412 = vrcp.f32 %v432_v18 }
 0x17f   :  { %v1683_v19 = vpop.eup %1410 }
 0x180   :  { %439 = vrot.lane.b32.xlu0 %v1683_v19, %s1552_s2 }
 0x181   :  { %v1687_v20 = vpop.eup %1412 }
 0x184   :  { %441 = vrot.lane.b32.xlu0 %v1687_v20, %s1552_s2 }
 0x1f2   :  { %v440_v21 = vpop.permute.xlu0 %439 }
 0x1f3   :  { %v445_v22 = vmul.f32 %v1683_v19, %v440_v21 }
 0x1f5   :  { %449 = vperm.xlu1 %1398, %v445_v22  }
 0x1f6   :  { %v442_v23 = vpop.permute.xlu0 %441 }
 0x1f7   :  { %v446_v24 = vmul.f32 %v1687_v20, %v442_v23 }
 0x1f9   :  { %461 = vperm.xlu1 %1398, %v446_v24  }
 0x274   :  { %v450_v33 = vpop.permute.xlu1 %449 }
 0x275   :  { %v458_v35 = vrot.slane %v450_v33, %v1694_v31 }
 0x277   :  { %v471_v36 = vmul.f32 %v458_v35, %v423_v7 }
 0x278   :  { %v462_v37 = vpop.permute.xlu1 %461 }
 0x279   :  { %v474_v38 = vsel %vm473_vm2, %v471_v36, 0.0  ;;  %v470_v39 = vrot.slane %v462_v37, %v1694_v31 }
 0x27a   :  { %v475_v40 = vrot.slane %v474_v38, 4 }
 0x27b   :  { %v472_v42 = vmul.f32 %v470_v39, %v424_v8 }
 0x27c   :  { %v476_v43 = vadd.f32 %v475_v40, %v474_v38 }
 0x27d   :  { %v481_v44 = vsel %vm473_vm2, %v472_v42, 0.0 }
 0x27e   :  { %v477_v45 = vrot.slane %v476_v43, 2  ;;  %v482_v46 = vrot.slane %v481_v44, 4 }
 0x280   :  { %v478_v47 = vadd.f32 %v477_v45, %v476_v43  ;;  %v483_v17 = vadd.f32 %v482_v46, %v481_v44 }
 0x282   :  { %v484_v48 = vrot.slane %v483_v17, 2  ;;  %v479_v51 = vrot.slane %v478_v47, 1 }
 0x284   :  { %v485_v49 = vadd.f32 %v484_v48, %v483_v17  ;;  %v480_v54 = vadd.f32 %v479_v51, %v478_v47 }
 0x286   :  { %v486_v53 = vrot.slane %v485_v49, 1 }
 0x288   :  { %v487_v56 = vadd.f32 %v486_v53, %v485_v49 }
 0x28a   :  { %v491_v59 = vsel %vm490_vm3, %v487_v56, %v480_v54 }
 0x28b   :  { %493 = vrot.lane.b32.xlu0 %v491_v59, %s1554_s21 }
 0x2fd   :  { %v494_v6 = vpop.permute.xlu0 %493 }
 0x2fe   :  { %v497_v7 = vsel %vm496_vm4, %v491_v59, %v494_v6 }
 0x2ff   :  { %v1710_v8 = vsub.f32 %v1621_v11, %v497_v7 }
 0x301   :  { %v502_v9 = vand.u32 2139095040, %v1710_v8  ;;  %v499_v14 = vand.u32 2147483647, %v1710_v8  ;;  %vm501_vm10 = vcmp.lt.s32.totalorder %v1710_v8, 0 }
 0x303   :  { %v503_v10 = vshrl.u32 %v502_v9, 23  ;;  %v506_v0 = vand.u32 8388607, %v499_v14  ;;  %vm500_vm11 = vcmp.le.f32.partialorder %v499_v14, 0.7853982 }
 0x305   :  { %v1280_v12 = vadd.s32 4294967169, %v503_v10  ;;  %v507_v36 = vor.u32 8388608, %v506_v0 }
 0x307   :  { %v509_v13 = vadd.s32 1, %v1280_v12  ;;  %v547_v51 = vshll.u32 %v507_v36, 8 }
 0x309   :  { %vm510_vm5 = vcmp.gt.s32.totalorder %v509_v13, 0 }
 0x30a   :  { %v511_v1 = vsel %vm510_vm5, %v509_v13, 0  ;;  %vm591_vm5 = vweird.f32 %v1710_v8 }
 0x30b   :  { %v513_v15 = vand.u32 31, %v511_v1  ;;  %v512_v18 = vshrl.u32 %v511_v1, 5 }
 0x30d   :  { %v514_v16 = vsub.s32 32, %v513_v15  ;;  %v516_v21 = vshll.u32 %v1544_v26, %v513_v15  ;;  %v519_v11 = vshll.u32 %v1545_v28, %v513_v15  ;;  %v522_v24 = vshll.u32 %v1546_v30, %v513_v15 }
 0x30e   :  { %v525_v27 = vshll.u32 %v1547_v32, %v513_v15  ;;  %v528_v33 = vshll.u32 %v1548_v34, %v513_v15  ;;  %vm531_vm0 = vcmp.lt.s32.totalorder %v512_v18, 1  ;;  %vm534_vm1 = vcmp.lt.s32.totalorder %v512_v18, 4 }
 0x30f   :  { %v517_v22 = vshrl.u32 %v1545_v28, %v514_v16  ;;  %v520_v23 = vshrl.u32 %v1546_v30, %v514_v16  ;;  %v523_v25 = vshrl.u32 %v1547_v32, %v514_v16  ;;  %v526_v29 = vshrl.u32 %v1548_v34, %v514_v16 }
 0x310   :  { %v529_v35 = vshrl.u32 %v1549_v41, %v514_v16  ;;  %v515_v46 = vshrl.u32 %v1544_v26, %v514_v16  ;;  %vm533_vm6 = vcmp.lt.s32.totalorder %v512_v18, 3  ;;  %vm532_vm7 = vcmp.lt.s32.totalorder %v512_v18, 2 }
 0x311   :  { %v518_v37 = vor.u32 %v517_v22, %v516_v21  ;;  %v521_v38 = vor.u32 %v520_v23, %v519_v11  ;;  %v524_v39 = vor.u32 %v523_v25, %v522_v24  ;;  %v527_v40 = vor.u32 %v526_v29, %v525_v27 }
 0x312   :  { %v530_v42 = vor.u32 %v529_v35, %v528_v33 }
 0x313   :  { %v536_v43 = vsel %vm534_vm1, %v524_v39, 2102212464  ;;  %v539_v44 = vsel %vm531_vm0, %v518_v37, %v521_v38  ;;  %v543_v45 = vsel %vm531_vm0, %v521_v38, %v524_v39  ;;  %v540_v47 = vsel %vm534_vm1, %v527_v40, 920167782 }
 0x314   :  { %v544_v17 = vsel %vm534_vm1, %v530_v42, 1326507024  ;;  %v541_v48 = vsel %vm533_vm6, %v524_v39, %v540_v47  ;;  %v535_v53 = vsel %vm531_vm0, %v515_v46, %v518_v37  ;;  %v537_v54 = vsel %vm533_vm6, %v521_v38, %v536_v43 }
 0x315   :  { %v545_v49 = vsel %vm533_vm6, %v527_v40, %v544_v17  ;;  %v542_v56 = vsel %vm532_vm7, %v539_v44, %v541_v48  ;;  %v538_v3 = vsel %vm532_vm7, %v535_v53, %v537_v54  ;;  %v1746_v54 = vpop.f32.mrb[0].mxu1 }
 0x316   :  { %v546_v59 = vsel %vm532_vm7, %v543_v45, %v545_v49  ;;  %v1730_v63 = vmul.u32.u64.low %v547_v51, %v542_v56  ;;  %v1731_v2 = vmul.u32.u64.high %v547_v51, %v542_v56, %v1730_v63  ;;  %v554_v5 = vmul.u32 %v547_v51, %v538_v3  ;;  %v1319_v56 = vpop.f32.mrb[1].mxu1 }
 0x317   :  { %v1727_v60 = vmul.u32.u64.low %v547_v51, %v546_v59  ;;  %v1728_v62 = vmul.u32.u64.high %v547_v51, %v546_v59, %v1727_v60 }
 0x318   :  { %v557_v4 = vadd.s32 1, %v1731_v2 }
 0x319   :  { %vm556_vm8 = vc.u32 %v1728_v62, %v1730_v63  ;;  %v555_v21 = vadd.s32 %v1730_v63, %v1728_v62 }
 0x31a   :  { %v558_v6 = vsel %vm556_vm8, %v557_v4, %v1731_v2 }
 0x31b   :  { %v559_v7 = vadd.s32 %v558_v6, %v554_v5  ;;  %v678_v5 = vcombine.high %v1667_v52, %v1667_v52 }
 0x31d   :  { %v560_v9 = vadd.s32 536870912, %v559_v7 }
 0x31f   :  { %v561_v10 = vshrl.u32 %v560_v9, 30 }
 0x321   :  { %v562_v12 = vshll.u32 %v561_v10, 30  ;;  %v585_v40 = vsub.s32 4, %v561_v10 }
 0x323   :  { %v563_v13 = vsub.s32 %v559_v7, %v562_v12  ;;  %v586_v43 = vsel %vm501_vm10, %v585_v40, %v561_v10 }
 0x324   :  { %v588_v44 = vsel %vm500_vm11, 0, %v586_v43 }
 0x325   :  { %v565_v1 = vsub.s32 0, %v563_v13  ;;  %v592_v45 = vand.u32 3, %v588_v44 }
 0x327   :  { %v1281_v15 = vmin.u32 %v565_v1, %v563_v13  ;;  %vm597_vm12 = vcmp.eq.s32.totalorder %v592_v45, 2  ;;  %vm594_vm13 = vcmp.eq.s32.totalorder %v592_v45, 0  ;;  %vm593_vm14 = vcmp.lt.s32.totalorder %v592_v45, 2 }
 0x329   :  { %v567_v16 = vclz %v1281_v15 }
 0x32b   :  { %v1282_v0 = vadd.s32 4294967294, %v567_v16 }
 0x32d   :  { %vm1283_vm9 = vcmp.lt.s32.totalorder %v1282_v0, 0 }
 0x32e   :  { %v570_v18 = vsel %vm1283_vm9, 0, %v1282_v0 }
 0x32f   :  { %v571_v11 = vsub.s32 32, %v570_v18  ;;  %v575_v22 = vsub.s32 4294967266, %v570_v18  ;;  %v572_v23 = vshll.u32 %v563_v13, %v570_v18 }
 0x331   :  { %v573_v24 = vshrl.u32 %v555_v21, %v571_v11  ;;  %v576_v25 = vadd.s32 127, %v575_v22 }
 0x333   :  { %v574_v27 = vor.u32 %v573_v24, %v572_v23  ;;  %v577_v29 = vshll.u32 %v576_v25, 23 }
 0x335   :  { %v578_v33 = vor.u32 4788187, %v577_v29  ;;  %v581_v36 = vcvt.s32.f32 %v574_v27 }
 0x337   :  { %v579_v35 = vand.u32 2147483647, %v578_v33 }
 0x339   :  { %v582_v37 = vmul.f32 %v581_v36, %v579_v35 }
 0x33b   :  { %v583_v38 = vxor.u32 2147483648, %v582_v37 }
 0x33d   :  { %v584_v39 = vsel %vm501_vm10, %v583_v38, %v582_v37 }
 0x33e   :  { %v587_v42 = vsel %vm500_vm11, %v1710_v8, %v584_v39 }
 0x33f   :  { %1414 = vcosq.f32 %v587_v42 }
 0x340   :  { %1416 = vsinq.f32 %v587_v42 }
 0x349   :  { %v1415_v46 = vpop.eup %1414 }
 0x34a   :  { %v1417_v47 = vpop.eup %1416  ;;  %v598_v17 = vxor.u32 2147483648, %v1415_v46 }
 0x34b   :  { %v595_v48 = vxor.u32 2147483648, %v1417_v47 }
 0x34c   :  { %v599_v49 = vsel %vm597_vm12, %v598_v17, %v1417_v47 }
 0x34d   :  { %v596_v51 = vsel %vm594_vm13, %v1415_v46, %v595_v48 }
 0x34e   :  { %v600_v14 = vsel %vm593_vm14, %v596_v51, %v599_v49  ;;  %v889_v51 = vld [vmem:[#allocation7 + $0x10] sm:$0xff] }
 0x34f   :  { %v1742_v53 = vsel %vm591_vm5, nan, %v600_v14  ;;  %v890_v14 = vld [vmem:[#allocation7 + $0x28] sm:$0xff] }
 0x350   :  { %1332 = vmatmul.mubr.msk.f32.vlgmr.msra.gmra.mrb[2].mxu1 %vm313_vm15, %v1742_v53  ;;  %v1355_v56 = vpack.c.bf16 %v890_v14, %v889_v51 }
 0x352   :  { %1356 = vmatpush3.bf16.msra.mxu0 %v1355_v56 }
 0x423   :  { %v673_v59 = vpop.f32.mrb[2].mxu1 }
 0x424   :  { %v687_v60 = vrot.slane %v673_v59, %v1673_v58  ;;  %v1333_v62 = vpop.f32.mrb[3].mxu1 }
 0x426   :  { %v688_v63 = vcombine.high %v687_v60, %v687_v60  ;;  %v695_v2 = vrot.slane %v687_v60, %v1673_v58 }
 0x428   :  { %v702_v3 = vrot.slane %v688_v63, %v1673_v58  ;;  %v706_v4 = vrot.slane %v695_v2, %v1677_v61 }
 0x42a   :  { %v710_v6 = vrot.slane %v702_v3, %v1677_v61  ;;  %v713_v7 = vadd.f32 %v706_v4, %v1667_v52 }
 0x42c   :  { %v714_v9 = vadd.f32 %v710_v6, %v678_v5  ;;  %v1285_v10 = vmul.f32 -1.442695, %v713_v7 }
 0x42e   :  { %1418 = vpow2.f32 %v1285_v10  ;;  %v1286_v12 = vmul.f32 -1.442695, %v714_v9 }
 0x430   :  { %1420 = vpow2.f32 %v1286_v12 }
 0x438   :  { %v1419_v13 = vpop.eup %1418 }
 0x439   :  { %v721_v1 = vadd.f32 1.0, %v1419_v13 }
 0x43a   :  { %v1421_v15 = vpop.eup %1420 }
 0x43b   :  { %v722_v16 = vadd.f32 1.0, %v1421_v15  ;;  %1422 = vrcp.f32 %v721_v1 }
 0x43d   :  { %1424 = vrcp.f32 %v722_v16 }
 0x445   :  { %v1756_v0 = vpop.eup %1422 }
 0x446   :  { %729 = vrot.lane.b32.xlu1 %v1756_v0, %s1552_s2 }
 0x447   :  { %v1760_v18 = vpop.eup %1424 }
 0x448   :  { %731 = vrot.lane.b32.xlu0 %v1760_v18, %s1552_s2 }
 0x4b8   :  { %v730_v52 = vpop.permute.xlu1 %729 }
 0x4b9   :  { %v735_v21 = vmul.f32 %v1756_v0, %v730_v52 }
 0x4ba   :  { %v732_v11 = vpop.permute.xlu0 %731 }
 0x4bb   :  { %v736_v22 = vmul.f32 %v1760_v18, %v732_v11  ;;  %739 = vperm.xlu1 %1398, %v735_v21  }
 0x4bd   :  { %751 = vperm.xlu0 %1399, %v736_v22  }
 0x53a   :  { %v740_v23 = vpop.permute.xlu1 %739 }
 0x53b   :  { %v748_v24 = vrot.slane %v740_v23, %v1694_v31 }
 0x53c   :  { %v752_v25 = vpop.permute.xlu0 %751 }
 0x53d   :  { %v761_v27 = vmul.f32 %v748_v24, %v713_v7  ;;  %v760_v29 = vrot.slane %v752_v25, %v1694_v31 }
 0x53f   :  { %v763_v33 = vsel %vm473_vm2, %v761_v27, 0.0  ;;  %v762_v35 = vmul.f32 %v760_v29, %v714_v9 }
 0x540   :  { %v764_v36 = vrot.slane %v763_v33, 4 }
 0x541   :  { %v770_v37 = vsel %vm473_vm2, %v762_v35, 0.0 }
 0x542   :  { %v765_v38 = vadd.f32 %v764_v36, %v763_v33  ;;  %v771_v39 = vrot.slane %v770_v37, 4 }
 0x544   :  { %v766_v40 = vrot.slane %v765_v38, 2  ;;  %v772_v42 = vadd.f32 %v771_v39, %v770_v37 }
 0x546   :  { %v767_v43 = vadd.f32 %v766_v40, %v765_v38  ;;  %v773_v44 = vrot.slane %v772_v42, 2 }
 0x548   :  { %v774_v45 = vadd.f32 %v773_v44, %v772_v42  ;;  %v768_v46 = vrot.slane %v767_v43, 1 }
 0x54a   :  { %v775_v47 = vrot.slane %v774_v45, 1  ;;  %v769_v17 = vadd.f32 %v768_v46, %v767_v43 }
 0x54c   :  { %v776_v48 = vadd.f32 %v775_v47, %v774_v45 }
 0x54e   :  { %v779_v49 = vsel %vm490_vm3, %v776_v48, %v769_v17 }
 0x54f   :  { %781 = vrot.lane.b32.xlu1 %v779_v49, %s1554_s21 }
 0x5c1   :  { %v782_v59 = vpop.permute.xlu1 %781 }
 0x5c2   :  { %v784_v60 = vsel %vm496_vm4, %v779_v49, %v782_v59 }
 0x5c3   :  { %v1774_v62 = vsub.f32 %v1710_v8, %v784_v60 }
 0x5c5   :  { %v789_v63 = vand.u32 2139095040, %v1774_v62  ;;  %v786_v5 = vand.u32 2147483647, %v1774_v62  ;;  %vm788_vm11 = vcmp.lt.s32.totalorder %v1774_v62, 0 }
 0x5c7   :  { %v790_v2 = vshrl.u32 %v789_v63, 23  ;;  %v793_v10 = vand.u32 8388607, %v786_v5  ;;  %vm787_vm12 = vcmp.le.f32.partialorder %v786_v5, 0.7853982 }
 0x5c9   :  { %v1287_v3 = vadd.s32 4294967169, %v790_v2  ;;  %v794_v24 = vor.u32 8388608, %v793_v10 }
 0x5cb   :  { %v796_v4 = vadd.s32 1, %v1287_v3  ;;  %v834_v45 = vshll.u32 %v794_v24, 8 }
 0x5cd   :  { %vm797_vm0 = vcmp.gt.s32.totalorder %v796_v4, 0 }
 0x5ce   :  { %v798_v6 = vsel %vm797_vm0, %v796_v4, 0  ;;  %vm878_vm0 = vweird.f32 %v1774_v62 }
 0x5cf   :  { %v800_v7 = vand.u32 31, %v798_v6  ;;  %v799_v12 = vshrl.u32 %v798_v6, 5 }
 0x5d1   :  { %v801_v9 = vsub.s32 32, %v800_v7  ;;  %v803_v13 = vshll.u32 %v1544_v26, %v800_v7  ;;  %v806_v8 = vshll.u32 %v1545_v28, %v800_v7  ;;  %v809_v16 = vshll.u32 %v1546_v30, %v800_v7 }
 0x5d2   :  { %v812_v21 = vshll.u32 %v1547_v32, %v800_v7  ;;  %v815_v22 = vshll.u32 %v1548_v34, %v800_v7  ;;  %vm818_vm1 = vcmp.lt.s32.totalorder %v799_v12, 1  ;;  %vm821_vm6 = vcmp.lt.s32.totalorder %v799_v12, 4 }
 0x5d3   :  { %v804_v1 = vshrl.u32 %v1545_v28, %v801_v9  ;;  %v807_v15 = vshrl.u32 %v1546_v30, %v801_v9  ;;  %v810_v52 = vshrl.u32 %v1547_v32, %v801_v9  ;;  %v813_v11 = vshrl.u32 %v1548_v34, %v801_v9 }
 0x5d4   :  { %v816_v23 = vshrl.u32 %v1549_v41, %v801_v9  ;;  %v802_v39 = vshrl.u32 %v1544_v26, %v801_v9  ;;  %vm820_vm7 = vcmp.lt.s32.totalorder %v799_v12, 3  ;;  %vm819_vm8 = vcmp.lt.s32.totalorder %v799_v12, 2 }
 0x5d5   :  { %v805_v25 = vor.u32 %v804_v1, %v803_v13  ;;  %v808_v27 = vor.u32 %v807_v15, %v806_v8  ;;  %v811_v29 = vor.u32 %v810_v52, %v809_v16  ;;  %v814_v33 = vor.u32 %v813_v11, %v812_v21 }
 0x5d6   :  { %v817_v35 = vor.u32 %v816_v23, %v815_v22 }
 0x5d7   :  { %v823_v36 = vsel %vm821_vm6, %v811_v29, 2102212464  ;;  %v826_v37 = vsel %vm818_vm1, %v805_v25, %v808_v27  ;;  %v830_v38 = vsel %vm818_vm1, %v808_v27, %v811_v29  ;;  %v827_v40 = vsel %vm821_vm6, %v814_v33, 920167782 }
 0x5d8   :  { %v831_v42 = vsel %vm821_vm6, %v817_v35, 1326507024  ;;  %v828_v43 = vsel %vm820_vm7, %v811_v29, %v827_v40  ;;  %v822_v46 = vsel %vm818_vm1, %v802_v39, %v805_v25  ;;  %v824_v47 = vsel %vm820_vm7, %v808_v27, %v823_v36 }
 0x5d9   :  { %v832_v44 = vsel %vm820_vm7, %v814_v33, %v831_v42  ;;  %v829_v17 = vsel %vm819_vm8, %v826_v37, %v828_v43  ;;  %v825_v59 = vsel %vm819_vm8, %v822_v46, %v824_v47  ;;  %vm1243_vm1 = vcmask 31744  }
 0x5da   :  { %v833_v48 = vsel %vm819_vm8, %v830_v38, %v832_v44  ;;  %v1794_v14 = vmul.u32.u64.low %v834_v45, %v829_v17  ;;  %v1795_v56 = vmul.u32.u64.high %v834_v45, %v829_v17, %v1794_v14  ;;  %v841_v63 = vmul.u32 %v834_v45, %v825_v59 }
 0x5db   :  { %v1791_v49 = vmul.u32.u64.low %v834_v45, %v833_v48  ;;  %v1792_v51 = vmul.u32.u64.high %v834_v45, %v833_v48, %v1791_v49 }
 0x5dc   :  { %v844_v60 = vadd.s32 1, %v1795_v56 }
 0x5dd   :  { %vm843_vm9 = vc.u32 %v1792_v51, %v1794_v14  ;;  %v842_v15 = vadd.s32 %v1794_v14, %v1792_v51 }
 0x5de   :  { %v845_v2 = vsel %vm843_vm9, %v844_v60, %v1795_v56 }
 0x5df   :  { %v846_v3 = vadd.s32 %v845_v2, %v841_v63  ;;  %v965_v2 = vcombine.high %v1746_v54, %v1746_v54 }
 0x5e1   :  { %v847_v4 = vadd.s32 536870912, %v846_v3 }
 0x5e3   :  { %v848_v6 = vshrl.u32 %v847_v4, 30 }
 0x5e5   :  { %v849_v7 = vshll.u32 %v848_v6, 30  ;;  %v872_v37 = vsub.s32 4, %v848_v6 }
 0x5e7   :  { %v850_v9 = vsub.s32 %v846_v3, %v849_v7  ;;  %v873_v39 = vsel %vm788_vm11, %v872_v37, %v848_v6 }
 0x5e8   :  { %v875_v40 = vsel %vm787_vm12, 0, %v873_v39 }
 0x5e9   :  { %v852_v10 = vsub.s32 0, %v850_v9  ;;  %v879_v42 = vand.u32 3, %v875_v40 }
 0x5eb   :  { %v1288_v12 = vmin.u32 %v852_v10, %v850_v9  ;;  %vm884_vm13 = vcmp.eq.s32.totalorder %v879_v42, 2  ;;  %vm881_vm14 = vcmp.eq.s32.totalorder %v879_v42, 0  ;;  %vm880_vm5 = vcmp.lt.s32.totalorder %v879_v42, 2 }
 0x5ed   :  { %v854_v13 = vclz %v1288_v12 }
 0x5ef   :  { %v1289_v8 = vadd.s32 4294967294, %v854_v13 }
 0x5f1   :  { %vm1290_vm10 = vcmp.lt.s32.totalorder %v1289_v8, 0 }
 0x5f2   :  { %v857_v1 = vsel %vm1290_vm10, 0, %v1289_v8 }
 0x5f3   :  { %v858_v16 = vsub.s32 32, %v857_v1  ;;  %v862_v52 = vsub.s32 4294967266, %v857_v1  ;;  %v859_v21 = vshll.u32 %v850_v9, %v857_v1 }
 0x5f5   :  { %v860_v11 = vshrl.u32 %v842_v15, %v858_v16  ;;  %v863_v22 = vadd.s32 127, %v862_v52  ;;  %v1555_v52 = vmov 9  }
 0x5f7   :  { %v861_v23 = vor.u32 %v860_v11, %v859_v21  ;;  %v864_v24 = vshll.u32 %v863_v22, 23 }
 0x5f9   :  { %v865_v25 = vor.u32 4788187, %v864_v24  ;;  %v868_v29 = vcvt.s32.f32 %v861_v23 }
 0x5fb   :  { %v866_v27 = vand.u32 2147483647, %v865_v25 }
 0x5fd   :  { %v869_v33 = vmul.f32 %v868_v29, %v866_v27 }
 0x5ff   :  { %v870_v35 = vxor.u32 2147483648, %v869_v33 }
 0x601   :  { %v871_v36 = vsel %vm788_vm11, %v870_v35, %v869_v33 }
 0x602   :  { %v874_v38 = vsel %vm787_vm12, %v1774_v62, %v871_v36 }
 0x603   :  { %1426 = vcosq.f32 %v874_v38 }
 0x604   :  { %1428 = vsinq.f32 %v874_v38 }
 0x60d   :  { %v1427_v43 = vpop.eup %1426 }
 0x60e   :  { %v1429_v44 = vpop.eup %1428  ;;  %v885_v45 = vxor.u32 2147483648, %v1427_v43 }
 0x60f   :  { %v882_v46 = vxor.u32 2147483648, %v1429_v44 }
 0x610   :  { %v886_v47 = vsel %vm884_vm13, %v885_v45, %v1429_v44 }
 0x611   :  { %v883_v17 = vsel %vm881_vm14, %v1427_v43, %v882_v46 }
 0x612   :  { %v887_v5 = vsel %vm880_vm5, %v883_v17, %v886_v47 }
 0x613   :  { %v888_v48 = vsel %vm878_vm0, nan, %v887_v5  ;;  %vm1187_vm0 = vcmask 261120  }
 0x614   :  { %1339 = vmatmul.mubr.msk.f32.vlgmr.msra.gmra.mrb[4].mxu0 %vm313_vm15, %v888_v48 }
 0x6e7   :  { %v960_v49 = vpop.f32.mrb[4].mxu0 }
 0x6e8   :  { %v974_v51 = vrot.slane %v960_v49, %v1673_v58  ;;  %v1340_v14 = vpop.f32.mrb[5].mxu0 }
 0x6ea   :  { %v975_v56 = vcombine.high %v974_v51, %v974_v51  ;;  %v982_v59 = vrot.slane %v974_v51, %v1673_v58 }
 0x6ec   :  { %v989_v60 = vrot.slane %v975_v56, %v1673_v58  ;;  %v993_v63 = vrot.slane %v982_v59, %v1677_v61 }
 0x6ee   :  { %v997_v3 = vrot.slane %v989_v60, %v1677_v61  ;;  %v1000_v4 = vadd.f32 %v993_v63, %v1746_v54 }
 0x6f0   :  { %v1001_v6 = vadd.f32 %v997_v3, %v965_v2  ;;  %v1292_v7 = vmul.f32 -1.442695, %v1000_v4 }
 0x6f2   :  { %1430 = vpow2.f32 %v1292_v7  ;;  %v1293_v9 = vmul.f32 -1.442695, %v1001_v6 }
 0x6f4   :  { %1432 = vpow2.f32 %v1293_v9 }
 0x6fc   :  { %v1431_v10 = vpop.eup %1430 }
 0x6fd   :  { %v1008_v12 = vadd.f32 1.0, %v1431_v10 }
 0x6fe   :  { %v1433_v13 = vpop.eup %1432 }
 0x6ff   :  { %v1009_v8 = vadd.f32 1.0, %v1433_v13  ;;  %1434 = vrcp.f32 %v1008_v12 }
 0x701   :  { %1436 = vrcp.f32 %v1009_v8 }
 0x709   :  { %v1435_v58 = vpop.eup %1434 }
 0x70a   :  { %1016 = vrot.lane.b32.xlu1 %v1435_v58, %s1552_s2 }
 0x70b   :  { %v1437_v1 = vpop.eup %1436 }
 0x70c   :  { %1018 = vrot.lane.b32.xlu0 %v1437_v1, %s1552_s2 }
 0x77c   :  { %v1017_v61 = vpop.permute.xlu1 %1016 }
 0x77d   :  { %v1022_v15 = vmul.f32 %v1435_v58, %v1017_v61 }
 0x77e   :  { %v1019_v54 = vpop.permute.xlu0 %1018 }
 0x77f   :  { %v1023_v16 = vmul.f32 %v1437_v1, %v1019_v54  ;;  %1026 = vperm.xlu1 %1398, %v1022_v15  }
 0x781   :  { %1038 = vperm.xlu0 %1399, %v1023_v16  }
 0x783   :  { %1401 = vset.pattern.permute.xlu1 %v1555_v52 }
 0x785   :  { %1400 = vset.pattern.permute.xlu0 %v1555_v52 }
 0x786   :  { %1192 = vperm.xlu0 %1400, %v1683_v19  }
 0x78a   :  { %1213 = vperm.xlu0 %1400, %v1760_v18  }
 0x78e   :  { %1230 = vperm.xlu0 %1400, %v1437_v1  }
 0x792   :  { %1179 = vrot.lane.b32.xlu0 %v888_v48, %s1556_s22  ;;  %v1198_v48 = vand.u32 127, %v394_v55 }
 0x794   :  { %v1215_v51 = vadd.s32 4294967292, %v1198_v48  ;;  %v1201_v59 = vsub.s32 %v1198_v48, %v1670_v57 }
 0x796   :  { %v1218_v60 = vsub.s32 %v1215_v51, %v1670_v57 }
 0x7fe   :  { %v1027_v21 = vpop.permute.xlu1 %1026 }
 0x7ff   :  { %v1035_v11 = vrot.slane %v1027_v21, %v1694_v31 }
 0x800   :  { %v1039_v22 = vpop.permute.xlu0 %1038 }
 0x801   :  { %v1048_v23 = vmul.f32 %v1035_v11, %v1000_v4  ;;  %v1047_v24 = vrot.slane %v1039_v22, %v1694_v31 }
 0x803   :  { %v1050_v25 = vsel %vm473_vm2, %v1048_v23, 0.0  ;;  %v1049_v27 = vmul.f32 %v1047_v24, %v1001_v6 }
 0x804   :  { %v1051_v29 = vrot.slane %v1050_v25, 4 }
 0x805   :  { %v1057_v33 = vsel %vm473_vm2, %v1049_v27, 0.0  ;;  %v1828_v46 = vpop.permute.xlu0 %1192 }
 0x806   :  { %v1052_v35 = vadd.f32 %v1051_v29, %v1050_v25  ;;  %v1058_v19 = vrot.slane %v1057_v33, 4  ;;  %v1202_v4 = vrot.slane %v1828_v46, %v1201_v59 }
 0x808   :  { %v1053_v36 = vrot.slane %v1052_v35, 2  ;;  %v1059_v18 = vadd.f32 %v1058_v19, %v1057_v33 }
 0x80a   :  { %v1054_v37 = vadd.f32 %v1053_v36, %v1052_v35  ;;  %v1060_v38 = vrot.slane %v1059_v18, 2 }
 0x80c   :  { %v1061_v39 = vadd.f32 %v1060_v38, %v1059_v18  ;;  %v1055_v40 = vrot.slane %v1054_v37, 1 }
 0x80e   :  { %v1062_v42 = vrot.slane %v1061_v39, 1  ;;  %v1056_v43 = vadd.f32 %v1055_v40, %v1054_v37 }
 0x810   :  { %v1063_v44 = vadd.f32 %v1062_v42, %v1061_v39 }
 0x812   :  { %v1066_v45 = vsel %vm490_vm3, %v1063_v44, %v1056_v43 }
 0x813   :  { %1068 = vrot.lane.b32.xlu1 %v1066_v45, %s1554_s21 }
 0x817   :  { %1195 = vperm.xlu1 %1401, %v1687_v20   ;;  %v1214_v20 = vpop.permute.xlu0 %1213 }
 0x818   :  { %v1223_v6 = vrot.slane %v1214_v20, %v1218_v60 }
 0x81b   :  { %1210 = vperm.xlu1 %1401, %v1756_v0   ;;  %v1232_v0 = vadd.s32 4294967288, %v1198_v48 }
 0x81d   :  { %v1235_v63 = vsub.s32 %v1232_v0, %v1670_v57 }
 0x81f   :  { %1227 = vperm.xlu1 %1401, %v1435_v58  }
 0x823   :  { %1176 = vrot.lane.b32.xlu1 %v1742_v53, %s1557_s23 }
 0x885   :  { %v1069_v31 = vpop.permute.xlu1 %1068 }
 0x886   :  { %v1071_v47 = vsel %vm496_vm4, %v1066_v45, %v1069_v31 }
 0x887   :  { %v1832_v17 = vsub.f32 %v1774_v62, %v1071_v47  ;;  %v1231_v62 = vpop.permute.xlu0 %1230 }
 0x888   :  { %v1240_v7 = vrot.slane %v1231_v62, %v1235_v63 }
 0x889   :  { %v1076_v5 = vand.u32 2139095040, %v1832_v17  ;;  %v1073_v56 = vand.u32 2147483647, %v1832_v17  ;;  %vm1165_vm5 = vweird.f32 %v1832_v17 }
 0x88b   :  { %v1077_v49 = vshrl.u32 %v1076_v5, 23  ;;  %v1080_v55 = vand.u32 8388607, %v1073_v56  ;;  %vm1074_vm11 = vcmp.le.f32.partialorder %v1073_v56, 0.7853982 }
 0x88d   :  { %v1294_v14 = vadd.s32 4294967169, %v1077_v49  ;;  %v1081_v13 = vor.u32 8388608, %v1080_v55 }
 0x88f   :  { %v1083_v53 = vadd.s32 1, %v1294_v14  ;;  %v1121_v18 = vshll.u32 %v1081_v13, 8 }
 0x891   :  { %vm1084_vm2 = vcmp.gt.s32.totalorder %v1083_v53, 0 }
 0x892   :  { %v1085_v2 = vsel %vm1084_vm2, %v1083_v53, 0  ;;  %vm1189_vm2 = vcmask 392192  }
 0x893   :  { %v1087_v3 = vand.u32 31, %v1085_v2  ;;  %v1086_v9 = vshrl.u32 %v1085_v2, 5 }
 0x895   :  { %v1088_v10 = vsub.s32 32, %v1087_v3  ;;  %v1090_v8 = vshll.u32 %v1544_v26, %v1087_v3  ;;  %v1093_v57 = vshll.u32 %v1545_v28, %v1087_v3  ;;  %v1096_v61 = vshll.u32 %v1546_v30, %v1087_v3 }
 0x896   :  { %v1196_v12 = vpop.permute.xlu1 %1195  ;;  %v1099_v15 = vshll.u32 %v1547_v32, %v1087_v3  ;;  %v1102_v52 = vshll.u32 %v1548_v34, %v1087_v3  ;;  %vm1105_vm6 = vcmp.lt.s32.totalorder %v1086_v9, 1  ;;  %vm1107_vm7 = vcmp.lt.s32.totalorder %v1086_v9, 3 }
 0x897   :  { %v1091_v58 = vshrl.u32 %v1545_v28, %v1088_v10  ;;  %v1094_v1 = vshrl.u32 %v1546_v30, %v1088_v10  ;;  %v1097_v54 = vshrl.u32 %v1547_v32, %v1088_v10  ;;  %v1100_v16 = vshrl.u32 %v1548_v34, %v1088_v10 }
 0x898   :  { %v1103_v21 = vshrl.u32 %v1549_v41, %v1088_v10  ;;  %v1206_v11 = vrot.slane %v1196_v12, %v1201_v59  ;;  %v1089_v28 = vshrl.u32 %v1544_v26, %v1088_v10  ;;  %vm1108_vm8 = vcmp.lt.s32.totalorder %v1086_v9, 4 }
 0x899   :  { %v1092_v22 = vor.u32 %v1091_v58, %v1090_v8  ;;  %v1095_v23 = vor.u32 %v1094_v1, %v1093_v57  ;;  %v1098_v25 = vor.u32 %v1097_v54, %v1096_v61  ;;  %v1101_v27 = vor.u32 %v1100_v16, %v1099_v15 }
 0x89a   :  { %v1211_v24 = vpop.permute.xlu1 %1210  ;;  %v1104_v30 = vor.u32 %v1103_v21, %v1102_v52  ;;  %vm1106_vm9 = vcmp.lt.s32.totalorder %v1086_v9, 2  ;;  %v1207_v31 = vsel %vm490_vm3, %v1206_v11, %v1202_v4 }
 0x89b   :  { %v1219_v29 = vrot.slane %v1211_v24, %v1218_v60  ;;  %v1113_v32 = vsel %vm1105_vm6, %v1092_v22, %v1095_v23  ;;  %v1110_v33 = vsel %vm1108_vm8, %v1098_v25, 2102212464  ;;  %v1114_v35 = vsel %vm1108_vm8, %v1101_v27, 920167782 }
 0x89c   :  { %v1117_v34 = vsel %vm1105_vm6, %v1095_v23, %v1098_v25  ;;  %v1118_v41 = vsel %vm1108_vm8, %v1104_v30, 1326507024  ;;  %v1115_v19 = vsel %vm1107_vm7, %v1098_v25, %v1114_v35  ;;  %v1109_v38 = vsel %vm1105_vm6, %v1089_v28, %v1092_v22 }
 0x89d   :  { %v1119_v36 = vsel %vm1107_vm7, %v1101_v27, %v1118_v41  ;;  %v1224_v26 = vsel %vm490_vm3, %v1223_v6, %v1219_v29  ;;  %v1116_v39 = vsel %vm1106_vm9, %v1113_v32, %v1115_v19  ;;  %v1111_v43 = vsel %vm1107_vm7, %v1095_v23, %v1110_v33 }
 0x89e   :  { %v1228_v37 = vpop.permute.xlu1 %1227  ;;  %v1120_v40 = vsel %vm1106_vm9, %v1117_v34, %v1119_v36  ;;  %v1867_v46 = vmul.u32.u64.low %v1121_v18, %v1116_v39  ;;  %v1868_v47 = vmul.u32.u64.high %v1121_v18, %v1116_v39, %v1867_v46  ;;  %v1244_v48 = vsel %vm1243_vm1, %v1207_v31, %v1224_v26  ;;  %v1180_v34 = vpop.permute.xlu0 %1179 }
 0x89f   :  { %v1236_v42 = vrot.slane %v1228_v37, %v1235_v63  ;;  %v1863_v44 = vmul.u32.u64.low %v1121_v18, %v1120_v40  ;;  %v1864_v45 = vmul.u32.u64.high %v1121_v18, %v1120_v40, %v1863_v44  ;;  %v1112_v20 = vsel %vm1106_vm9, %v1109_v38, %v1111_v43 }
 0x8a0   :  { %v1131_v51 = vadd.s32 1, %v1868_v47  ;;  %v1128_v0 = vmul.u32 %v1121_v18, %v1112_v20  ;;  %vm1250_vm1 = vcmask 523264   ;;  %vm1252_vm6 = vcmask 621568  }
 0x8a1   :  { %v1241_v5 = vsel %vm490_vm3, %v1240_v7, %v1236_v42  ;;  %vm1130_vm10 = vc.u32 %v1864_v45, %v1867_v46  ;;  %v1129_v7 = vadd.s32 %v1867_v46, %v1864_v45 }
 0x8a2   :  { %v1245_v49 = vsel %vm496_vm4, %v1244_v48, %v1241_v5  ;;  %v1132_v14 = vsel %vm1130_vm10, %v1131_v51, %v1868_v47  ;;  %vm1075_vm4 = vcmp.lt.s32.totalorder %v1832_v17, 0  ;;  %v1177_v35 = vpop.permute.xlu1 %1176 }
 0x8a3   :  { %1247 = vrot.lane.b32.xlu0 %v1245_v49, %s1558_s24  ;;  %v1133_v53 = vadd.s32 %v1132_v14, %v1128_v0  ;;  %v1186_v41 = vsel %vm313_vm15, %v1661_v50, %v1177_v35 }
 0x8a4   :  { %v1188_v36 = vsel %vm1187_vm0, %v1186_v41, %v1180_v34 }
 0x8a5   :  { %v1134_v59 = vadd.s32 536870912, %v1133_v53 }
 0x8a7   :  { %v1135_v60 = vshrl.u32 %v1134_v59, 30 }
 0x8a9   :  { %v1136_v63 = vshll.u32 %v1135_v60, 30  ;;  %v1159_v21 = vsub.s32 4, %v1135_v60 }
 0x8ab   :  { %v1137_v62 = vsub.s32 %v1133_v53, %v1136_v63  ;;  %v1160_v22 = vsel %vm1075_vm4, %v1159_v21, %v1135_v60 }
 0x8ac   :  { %v1162_v23 = vsel %vm1074_vm11, 0, %v1160_v22 }
 0x8ad   :  { %v1139_v2 = vsub.s32 0, %v1137_v62  ;;  %v1166_v24 = vand.u32 3, %v1162_v23 }
 0x8af   :  { %v1295_v55 = vmin.u32 %v1139_v2, %v1137_v62  ;;  %vm1171_vm12 = vcmp.eq.s32.totalorder %v1166_v24, 2  ;;  %vm1168_vm13 = vcmp.eq.s32.totalorder %v1166_v24, 0  ;;  %vm1167_vm14 = vcmp.lt.s32.totalorder %v1166_v24, 2 }
 0x8b1   :  { %v1141_v3 = vclz %v1295_v55 }
 0x8b3   :  { %v1296_v4 = vadd.s32 4294967294, %v1141_v3 }
 0x8b5   :  { %vm1297_vm3 = vcmp.lt.s32.totalorder %v1296_v4, 0 }
 0x8b6   :  { %v1144_v6 = vsel %vm1297_vm3, 0, %v1296_v4 }
 0x8b7   :  { %v1145_v9 = vsub.s32 32, %v1144_v6  ;;  %v1149_v10 = vsub.s32 4294967266, %v1144_v6  ;;  %v1146_v12 = vshll.u32 %v1137_v62, %v1144_v6 }
 0x8b9   :  { %v1147_v13 = vshrl.u32 %v1129_v7, %v1145_v9  ;;  %v1150_v8 = vadd.s32 127, %v1149_v10 }
 0x8bb   :  { %v1148_v57 = vor.u32 %v1147_v13, %v1146_v12  ;;  %v1151_v58 = vshll.u32 %v1150_v8, 23 }
 0x8bd   :  { %v1152_v1 = vor.u32 4788187, %v1151_v58  ;;  %v1155_v15 = vcvt.s32.f32 %v1148_v57 }
 0x8bf   :  { %v1153_v61 = vand.u32 2147483647, %v1152_v1 }
 0x8c1   :  { %v1156_v54 = vmul.f32 %v1155_v15, %v1153_v61 }
 0x8c3   :  { %v1157_v16 = vxor.u32 2147483648, %v1156_v54 }
 0x8c5   :  { %v1158_v52 = vsel %vm1075_vm4, %v1157_v16, %v1156_v54 }
 0x8c6   :  { %v1161_v11 = vsel %vm1074_vm11, %v1832_v17, %v1158_v52 }
 0x8c7   :  { %1438 = vcosq.f32 %v1161_v11 }
 0x8c8   :  { %1440 = vsinq.f32 %v1161_v11 }
 0x8d1   :  { %v1439_v28 = vpop.eup %1438 }
 0x8d2   :  { %v1441_v25 = vpop.eup %1440  ;;  %v1172_v27 = vxor.u32 2147483648, %v1439_v28 }
 0x8d3   :  { %v1169_v30 = vxor.u32 2147483648, %v1441_v25 }
 0x8d4   :  { %v1173_v29 = vsel %vm1171_vm12, %v1172_v27, %v1441_v25 }
 0x8d5   :  { %v1170_v32 = vsel %vm1168_vm13, %v1439_v28, %v1169_v30 }
 0x8d6   :  { %v1174_v56 = vsel %vm1167_vm14, %v1170_v32, %v1173_v29 }
 0x8d7   :  { %v1175_v33 = vsel %vm1165_vm5, nan, %v1174_v56 }
 0x8d8   :  { %1183 = vrot.lane.b32.xlu1 %v1175_v33, %s1559_s25 }
 0x915   :  { %v1248_v18 = vpop.permute.xlu0 %1247 }
 0x94a   :  { %v1184_v19 = vpop.permute.xlu1 %1183 }
 0x94b   :  { %v1190_v26 = vsel %vm1189_vm2, %v1188_v36, %v1184_v19 }
 0x94c   :  { %v1251_v17 = vsel %vm1250_vm1, %v1190_v26, %v1248_v18 }
 0x94d   :  { %v1253_v37 = vsel %vm1252_vm6, %v1251_v17, 0.0 }
 0x94e   :  { %1254 = vst [vmem:[#allocation8] sm:$0x3] %v1253_v37 }
 0x94f   :  { %1519 = shalt.err (!%p1516_p0)
}
 0x950   :  { %s1520_s4 = scalar_lea.hbm %s1900_s3, 32 }
 0x951   :  { %p1521_p1 = scmp.ne.s32.totalorder %s1900_s3, %s1520_s4  ;;  %p1524_p2 = scmp.lt.u32.totalorder %s1520_s4, %s1900_s3 }
 0x953   :  { %p1526_p3 = pnand %p1524_p2, %p1521_p1 }
 0x955   :  { %1529 = shalt.err (!%p1526_p3)
}
 0x956   :  { %1264 = dma.vmem_to_hbm [thread:$0]  %s1262_s27, 32, %s1900_s3, [#allocation4]  }
 0x957   :  { %1534 = dma.done.wait [#allocation4], 32  }
 0x958   :  { %1535 = vsyncadd [#allocation4], 4294967264 }
 0x959   :  { %1268 = vsyncpa [#allocation3], 1 }
 0x95a   :  { %1269 = vsyncpa [#allocation6], 1 }
 0x95b   :  { %1270 = vsyncpa [#allocation4], 1 }

</bundles_post_ra>
